<compile_context>
chip_gen: v6e
topology: v6e:2x2x1
jax: 0.10.0
libtpu: 0.0.40
codegen_flags: <defaults>
</compile_context>

<pallas_src>
import math

import jax
import jax.numpy as jnp
from jax.experimental import pallas as pl
from jax.experimental.pallas import tpu as pltpu

_LANE = 128
_SUBLANE = 8


def _cdiv(a, b):
    return (a + b - 1) // b


def _round_up(x, m):
    return ((x + m - 1) // m) * m


def _vmem_budget():
    """Generation-aware (tile-selection budget, scoped vmem limit) in bytes."""
    try:
        cap = int(pltpu.get_tpu_info().vmem_capacity_bytes)
    except Exception:
        cap = 64 * 1024 * 1024          # v7x-sized fallback — safe everywhere
    budget = int(cap * 0.60)            # used for tile-size selection
    limit = min(int(cap * 0.75), cap - (8 << 20))   # Mosaic headroom
    return budget, max(limit, budget)


# --------------------------------------------------------------------------
# Kernel 1: support = x @ W   (small; x row-tiled, weight resident)
# --------------------------------------------------------------------------
def _support_kernel(x_ref, w_ref, o_ref):
    # x_ref: (1, TR, F_in)   w_ref: (F_in, F_pad)   o_ref: (1, TR, F_pad)
    o_ref[0] = jnp.dot(x_ref[0], w_ref[...],
                       preferred_element_type=jnp.float32).astype(o_ref.dtype)


# --------------------------------------------------------------------------
# Kernel 2: output = adj @ support (+ bias)
#   grid = (B, row tiles, k tiles); fp32 accumulator carried over k.
# --------------------------------------------------------------------------
def _adj_matmul_kernel(adj_ref, sup_ref, o_ref, acc_ref):
    # adj_ref: (1, TM, TK)  sup_ref: (1, TK, F_pad)  o_ref: (1, TM, F_pad)
    k = pl.program_id(2)

    @pl.when(k == 0)
    def _():
        acc_ref[...] = jnp.zeros_like(acc_ref)

    acc_ref[...] += jnp.dot(adj_ref[0], sup_ref[0],
                            preferred_element_type=jnp.float32)

    @pl.when(k == pl.num_programs(2) - 1)
    def _():
        o_ref[0] = acc_ref[...].astype(o_ref.dtype)


def _adj_matmul_bias_kernel(adj_ref, sup_ref, b_ref, o_ref, acc_ref):
    k = pl.program_id(2)

    @pl.when(k == 0)
    def _():
        acc_ref[...] = jnp.zeros_like(acc_ref)

    acc_ref[...] += jnp.dot(adj_ref[0], sup_ref[0],
                            preferred_element_type=jnp.float32)

    @pl.when(k == pl.num_programs(2) - 1)
    def _():
        o_ref[0] = (acc_ref[...] + b_ref[...]).astype(o_ref.dtype)


# --------------------------------------------------------------------------
# Wrapper
# --------------------------------------------------------------------------
def graph_convolution(x, adj, weight, bias=None, *, compute_dtype=None):
    """Pallas GCN layer: adj @ (x @ weight) [+ bias].

    x: (B, N, F_in)  adj: (B, N, N)  weight: (F_in, F_out)
    bias: (1, 1, F_out) / (F_out,) / None
    compute_dtype: dtype for adj & support in the big matmul (default x.dtype;
      pass jnp.bfloat16 explicitly for fp32 inputs on v5e).
    """
    B, N, F_in = x.shape
    assert weight.shape[0] == F_in
    assert adj.shape == (B, N, N)
    F_out = weight.shape[1]

    out_dtype = x.dtype
    if compute_dtype is None:
        compute_dtype = x.dtype
    compute_dtype = jnp.dtype(compute_dtype)

    budget, vmem_limit = _vmem_budget()

    F_pad = _round_up(F_out, _LANE)                 # lane-dense output stores
    x_b = jnp.dtype(x.dtype).itemsize
    adj_b = compute_dtype.itemsize
    sup_b = compute_dtype.itemsize
    out_b = jnp.dtype(out_dtype).itemsize

    # ---- tile selection for kernel 2 (adj @ support) -----------------------
    def k2_bytes(tm_, tk_):
        return (2 * tm_ * tk_ * adj_b               # adj tile (double-buffered)
                + 2 * tk_ * F_pad * sup_b           # support tile (double-buffered)
                + 2 * tm_ * F_pad * out_b           # output tile (double-buffered)
                + tm_ * F_pad * 4                   # fp32 accumulator scratch
                + 2 * F_pad * 4)                    # bias

    # Row tile: aim for 512 (HBM-roofline sweet spot); only shrink when even
    # the minimum contraction tile (128) would not fit the budget.
    tm = _round_up(min(N, 512), _SUBLANE)
    while tm > _SUBLANE and k2_bytes(tm, _LANE) > budget:
        tm = max(_SUBLANE, _round_up(tm // 2, _SUBLANE))
    nj = _cdiv(N, tm)
    tm = _round_up(_cdiv(N, nj), _SUBLANE)          # balanced row tiles
    n_rows_pad = nj * tm

    # Contraction tile over N.
    full_k = _round_up(N, _SUBLANE)
    if k2_bytes(tm, full_k) <= budget:
        tk, nk = full_k, 1                          # whole contraction in one step
    else:
        c1 = 2 * tm * adj_b + 2 * F_pad * sup_b
        c0 = 2 * tm * F_pad * out_b + tm * F_pad * 4 + 2 * F_pad * 4
        tk_fit = max(_LANE, ((budget - c0) // c1) // _LANE * _LANE)
        tk_fit = min(tk_fit, _round_up(N, _LANE))
        nk = _cdiv(N, tk_fit)
        tk = _round_up(_cdiv(N, nk), _LANE)         # balanced, multiple of 128
    n_k_pad = nk * tk

    # ---- kernel 1: support = x @ W  (rows padded to n_k_pad) ---------------
    w_c = weight.astype(x.dtype)                    # homogeneous MXU pass
    if F_pad != F_out:
        w_c = jnp.pad(w_c, ((0, 0), (0, F_pad - F_out)))
    x_p = jnp.pad(x, ((0, 0), (0, n_k_pad - N), (0, 0))) if n_k_pad != N else x

    def k1_bytes(tr_):
        return (2 * tr_ * F_in * x_b                # x row tile
                + 2 * F_in * F_pad * x_b            # weight (resident)
                + 2 * tr_ * F_pad * sup_b)          # support out tile

    tr = None
    for cand in (tk, 1024, 512, 256, 128):
        if cand <= n_k_pad and n_k_pad % cand == 0 and k1_bytes(cand) <= budget:
            tr = cand
            break

    if tr is not None:
        support = pl.pallas_call(
            _support_kernel,
            out_shape=jax.ShapeDtypeStruct((B, n_k_pad, F_pad), compute_dtype),
            grid_spec=pltpu.PrefetchScalarGridSpec(
                num_scalar_prefetch=0,
                grid=(B, n_k_pad // tr),
                in_specs=[
                    pl.BlockSpec((1, tr, F_in), lambda b, i: (b, i, 0)),
                    pl.BlockSpec((F_in, F_pad), lambda b, i: (0, 0)),
                ],
                out_specs=pl.BlockSpec((1, tr, F_pad), lambda b, i: (b, i, 0)),
            ),
            compiler_params=pltpu.CompilerParams(
                dimension_semantics=("parallel", "parallel"),
                vmem_limit_bytes=vmem_limit),
            cost_estimate=pl.CostEstimate(
                flops=2 * B * n_k_pad * F_in * F_pad,
                transcendentals=0,
                bytes_accessed=(B * n_k_pad * F_in * x_b + F_in * F_pad * x_b
                                + B * n_k_pad * F_pad * sup_b)),
        )(x_p, w_c)
    else:
        # Degenerate shapes (huge F_in*F_pad): graceful XLA fallback.
        support = jnp.matmul(x_p, w_c).astype(compute_dtype)

    # ---- kernel 2: output = adj @ support (+ bias) --------------------------
    # Cast adj to compute_dtype so the dominant matmul is a true (e.g. bf16)
    # MXU pass and adj VMEM/HBM traffic matches the support dtype.
    adj_c = adj.astype(compute_dtype)
    if n_rows_pad != N or n_k_pad != N:
        adj_c = jnp.pad(adj_c, ((0, 0), (0, n_rows_pad - N), (0, n_k_pad - N)))

    in_specs = [
        pl.BlockSpec((1, tm, tk), lambda b, j, k: (b, j, k)),      # adj tile
        pl.BlockSpec((1, tk, F_pad), lambda b, j, k: (b, k, 0)),   # support tile
    ]
    args = (adj_c, support)
    kernel = _adj_matmul_kernel
    if bias is not None:
        b_p = jnp.asarray(bias, dtype=jnp.float32).reshape(1, F_out)
        if F_pad != F_out:
            b_p = jnp.pad(b_p, ((0, 0), (0, F_pad - F_out)))
        in_specs.append(pl.BlockSpec((1, F_pad), lambda b, j, k: (0, 0)))
        args = args + (b_p,)
        kernel = _adj_matmul_bias_kernel

    sup_reads = B * n_k_pad * F_pad * sup_b * (1 if nk == 1 else nj)
    out = pl.pallas_call(
        kernel,
        out_shape=jax.ShapeDtypeStruct((B, n_rows_pad, F_pad), out_dtype),
        grid_spec=pltpu.PrefetchScalarGridSpec(
            num_scalar_prefetch=0,
            grid=(B, nj, nk),
            in_specs=in_specs,
            out_specs=pl.BlockSpec((1, tm, F_pad), lambda b, j, k: (b, j, 0)),
            scratch_shapes=[pltpu.VMEM((tm, F_pad), jnp.float32)],
        ),
        compiler_params=pltpu.CompilerParams(
            # Batch AND row-tile axes are independent -> both "parallel", so
            # megacore / v7x 2-TC sharding works even when B == 1. The
            # contraction axis carries the fp32 accumulator -> "arbitrary",
            # and it is last (reduction-axis-last convention).
            dimension_semantics=("parallel", "parallel", "arbitrary"),
            vmem_limit_bytes=vmem_limit),
        cost_estimate=pl.CostEstimate(
            flops=2 * B * n_rows_pad * n_k_pad * F_pad,
            transcendentals=0,
            bytes_accessed=(B * n_rows_pad * n_k_pad * adj_b + sup_reads
                            + B * n_rows_pad * F_pad * out_b)),
    )(*args)

    if n_rows_pad != N or F_pad != F_out:
        out = out[:, :N, :F_out]
    return out


def init_gcn_params(key, in_features, out_features, bias=False):
    """Matches reset_parameters(): U(-stdv, stdv), stdv = 1/sqrt(F_out)."""
    stdv = 1.0 / math.sqrt(out_features)
    kw, kb = jax.random.split(key)
    weight = jax.random.uniform(kw, (in_features, out_features),
                                dtype=jnp.float32, minval=-stdv, maxval=stdv)
    b = None
    if bias:
        b = jax.random.uniform(kb, (1, 1, out_features),
                               dtype=jnp.float32, minval=-stdv, maxval=stdv)
    return weight, b


if __name__ == "__main__":
    key = jax.random.PRNGKey(0)
    k1, k2, k3, k4, k5 = jax.random.split(key, 5)

    # Case 1: fp32, bias=False (module default). B=2, N=16, F_in=32, F_out=32.
    B, N, F_in, F_out = 2, 16, 32, 32
    x = jax.random.normal(k1, (B, N, F_in), dtype=jnp.float32)
    adj = jax.random.uniform(k2, (B, N, N), dtype=jnp.float32)
    weight, _ = init_gcn_params(k3, F_in, F_out, bias=False)
    out = jax.block_until_ready(graph_convolution(x, adj, weight))
    ref = jnp.matmul(adj, jnp.matmul(x, weight))
    assert out.shape == (B, N, F_out)
    assert jnp.allclose(out, ref, atol=1e-4, rtol=1e-4)

    # Case 2: fp32, bias=True.
    weight_b, bias_b = init_gcn_params(k3, F_in, F_out, bias=True)
    out_b = jax.block_until_ready(graph_convolution(x, adj, weight_b, bias=bias_b))
    ref_b = jnp.matmul(adj, jnp.matmul(x, weight_b)) + bias_b
    assert jnp.allclose(out_b, ref_b, atol=1e-4, rtol=1e-4)

    # Case 3: bf16 inputs, B=3, N not a multiple of 8/128, F_out already 128.
    # Exercises row/contraction padding and the bf16 adj@support MXU path.
    B3, N3, F_in3, F_out3 = 3, 40, 24, 128
    x3 = jax.random.normal(k4, (B3, N3, F_in3),
                           dtype=jnp.float32).astype(jnp.bfloat16)
    adj3 = jax.random.uniform(k5, (B3, N3, N3), dtype=jnp.float32)
    w3, _ = init_gcn_params(k3, F_in3, F_out3, bias=False)
    out3 = jax.block_until_ready(graph_convolution(x3, adj3, w3))
    # Quantization-faithful reference (bf16 support / bf16 adj, fp32 accum).
    sup3 = jnp.matmul(x3.astype(jnp.float32),
                      w3.astype(jnp.bfloat16).astype(jnp.float32)
                      ).astype(jnp.bfloat16)
    ref3 = jnp.matmul(adj3.astype(jnp.bfloat16).astype(jnp.float32),
                      sup3.astype(jnp.float32))
    assert out3.shape == (B3, N3, F_out3)
    assert jnp.allclose(out3.astype(jnp.float32), ref3, atol=5e-2, rtol=5e-2)

    print("KERNEL_OK")
</pallas_src>

<mosaic_0001>
module attributes {stable_mosaic.version = 11 : i64} {
  func.func @_support_kernel(%arg0: i32, %arg1: i32, %arg2: memref<1x16x32xf32, #tpu.memory_space<vmem>>, %arg3: memref<32x128xf32, #tpu.memory_space<vmem>>, %arg4: memref<1x16x128xf32, #tpu.memory_space<vmem>>) attributes {dimension_semantics = [#tpu.dimension_semantics<parallel>, #tpu.dimension_semantics<parallel>], iteration_bounds = array<i64: 2, 1>, scalar_prefetch = 0 : i64, scratch_operands = 0 : i64, tpu.core_type = #tpu.core_type<tc>, window_params = [{transform_indices = @transform_0, window_bounds = array<i64: 1, 16, 32>}, {pipeline_mode = #tpu.pipeline_mode<synchronous>, transform_indices = @transform_1, window_bounds = array<i64: 32, 128>}, {transform_indices = @transform_2, window_bounds = array<i64: 1, 16, 128>}]} {
    %c0 = arith.constant 0 : index
    %c0_0 = arith.constant 0 : index
    %c0_1 = arith.constant 0 : index
    %0 = vector.load %arg2[%c0, %c0_0, %c0_1] : memref<1x16x32xf32, #tpu.memory_space<vmem>>, vector<1x16x32xf32>
    %1 = vector.shape_cast %0 : vector<1x16x32xf32> to vector<16x32xf32>
    %c0_2 = arith.constant 0 : index
    %c0_3 = arith.constant 0 : index
    %2 = vector.load %arg3[%c0_2, %c0_3] : memref<32x128xf32, #tpu.memory_space<vmem>>, vector<32x128xf32>
    %cst = arith.constant dense<0.000000e+00> : vector<16x128xf32>
    %3 = tpu.matmul %1, %2, %cst {dimension_numbers = #tpu.dot_dimension_numbers<[1], [0], [0], [1], [0, 0, 1, 1], [], []>} : vector<16x32xf32>, vector<32x128xf32>, vector<16x128xf32> -> vector<16x128xf32>
    %c0_4 = arith.constant 0 : index
    %c0_5 = arith.constant 0 : index
    %c0_6 = arith.constant 0 : index
    %4 = vector.load %arg4[%c0_4, %c0_5, %c0_6] : memref<1x16x128xf32, #tpu.memory_space<vmem>>, vector<1x16x128xf32>
    %5 = vector.shape_cast %4 : vector<1x16x128xf32> to vector<16x128xf32>
    %6 = vector.shape_cast %3 : vector<16x128xf32> to vector<1x16x128xf32>
    tpu.vector_store %arg4[%c0_4, %c0_5, %c0_6], %6 {strides = array<i32>} : memref<1x16x128xf32, #tpu.memory_space<vmem>>, vector<1x16x128xf32>,
    return
  }
  func.func @transform_0(%arg0: i32, %arg1: i32) -> (i32, i32, i32) {
    %c0_i32 = arith.constant 0 : i32
    %c0_i32_0 = arith.constant 0 : i32
    return %arg0, %arg1, %c0_i32 : i32, i32, i32
  }
  func.func @transform_1(%arg0: i32, %arg1: i32) -> (i32, i32) {
    %c0_i32 = arith.constant 0 : i32
    %c0_i32_0 = arith.constant 0 : i32
    %c0_i32_1 = arith.constant 0 : i32
    return %c0_i32, %c0_i32_0 : i32, i32
  }
  func.func @transform_2(%arg0: i32, %arg1: i32) -> (i32, i32, i32) {
    %c0_i32 = arith.constant 0 : i32
    %c0_i32_0 = arith.constant 0 : i32
    return %arg0, %arg1, %c0_i32 : i32, i32, i32
  }
}

</mosaic_0001>

<bundles_post_ra>
// kernel: tpu_custom_call.1
= control target key start
LH: loop header
LB: loop body
LE: loop exit
PB: predicated region body
PF: predicated region fallthrough
CT: control target
= control target key end

     0   :  { %7 = vsyncpa [#allocation3], 0  ;;  %s866_s0 = inlined_call_operand.hbm [shape: f32[2,16,32], index: 0, kind: input, shape index: {}]   ;;  %s867_s1 = inlined_call_operand.hbm [shape: f32[32,128], index: 1, kind: input, shape index: {}]   ;;  %s868_s2 = inlined_call_operand.hbm [shape: f32[2,16,128], index: 2, kind: output, shape index: {}]  }
   0x1   :  { %9 = vsyncpa [#allocation3 + $0x1], 0 }
   0x2   :  { %10 = vsyncpa [#allocation6], 0 }
   0x3   :  { %11 = vsyncpa [#allocation4], 0 }
   0x4   :  { %13 = vsyncpa [#allocation4 + $0x1], 0  ;;  %s677_s9 = smov 0   ;;  %s679_s10 = smov 0  }
   0x5   :  { %s681_s11 = smov 0   ;;  %s683_s12 = smov 0  }
   0x6   :  { %s685_s13 = smov 0   ;;  %s687_s14 = smov 0  }
   0x7 LB: > { %s400_s15 = sadd.s32 4294967295, %s653_s14   ;;  %s401_s16 = sadd.s32 4294967294, %s653_s14   ;;  %s653_s14 = sphi %s687_s14, %s19_s14   ;;  %s649_s13 = sphi %s685_s13, %s888_s13   ;;  %s645_s12 = sphi %s683_s12, %s887_s12   ;;  %s641_s11 = sphi %s681_s11, %s886_s11   ;;  %s637_s10 = sphi %s679_s10, %s885_s10   ;;  %s633_s9 = sphi %s677_s9, %s884_s9  }
   0x8   : > { %p53_p0 = scmp.ne.s32.totalorder %s637_s10, %s633_s9  ;;  %p711_p1 = scmp.eq.s32.totalorder %s400_s15, 0 }
   0x9   : > { %p715_p2 = scmp.eq.s32.totalorder %s400_s15, 1  ;;  %p106_p3 = scmp.eq.s32.totalorder %s401_s16, 1 }
   0xa   : > { %p721_p4 = por %p711_p1, %p53_p0  ;;  %p402_p5 = scmp.ge.s32.totalorder %s653_s14, 1 }
   0xb   : > { %p726_p6 = por %p106_p3, %p53_p0  ;;  %p113_p7 = scmp.lt.s32.totalorder %s653_s14, 3 }
   0xc   : > { %s873_s19 = scalar_select %p721_p4, 1, 0 }
   0xd   : > { %s874_s20 = scalar_select %p726_p6, 1, 0 }
   0xe   : > { %p731_p8 = pnand %p402_p5, %p113_p7  ;;  %s655_s22 = smov [#allocation5]  }
   0xf   : > { %s125_s23 = sshll.u32 %s655_s22, 4  ;;  %s31_s25 = sadd.s32 1, %s649_s13  ;;  %s126_s23 = int_to_ptr.vmem [resolvable:$true] %s125_s23 }
  0x10   : > { %p446_p9 = pneg %p731_p8  ;;  %s526_s26 = scalar_lea.vmem %s126_s23, 512 }
  0x11   : > { %p527_p13 = scmp.ne.s32.totalorder %s126_s23, %s526_s26  ;;  %p534_p5 = scmp.lt.s32.totalorder %s126_s23, %s126_s23 }
  0x12   : > { %p740_p11 = pnand %p446_p9, %p711_p1  ;;  %p535_p7 = scmp.lt.s32.totalorder %s526_s26, %s526_s26 }
  0x14   : > { %p517_p12 = pneg %p740_p11  ;;  %p536_p6 = por %p535_p7, %p534_p5 }
  0x16   : > { %p529_p0 = pnand %p527_p13, %p517_p12 }
  0x18   : > { %p530_p3 = pneg %p529_p0 }
  0x1a   : > { %p537_p4 = pnand %p536_p6, %p530_p3 }
  0x1c   : > { %540 = shalt.err (!%p537_p4)
}
  0x1d   : > { %s870_s27 = smov 128   ;;  %s657_s28 = smov 8  }
  0x1e   : > { %449 = dma.hbm_to_vmem [thread:$0]  (!%p740_p11), %s867_s1, 512, %s126_s23, [#allocation6], %s870_s27, %s870_s27, %s657_s28  }
  0x1f   : > { %p33_p4 = scmp.ge.s32.totalorder %s31_s25, 2  ;;  %s40_s3 = sadd.s32 1, %s641_s11 }
  0x20   : > { %p47_p6 = scmp.ne.s32.totalorder %s641_s11, %s637_s10  ;;  %p48_p9 = scmp.eq.s32.totalorder %s653_s14, 0 }
  0x21   : > { %s890_s25 = smov (%p33_p4, %s31_s25), 0  ;;  %p459_p0 = scmp.lt.s32.totalorder %s653_s14, 2 }
  0x22   : > { %p761_p12 = por %p48_p9, %p47_p6  ;;  %p767_p13 = por %p715_p2, %p47_p6 }
  0x23   : > { %s35_s6 = ssub.s32 %s649_s13, %s890_s25  ;;  %s139_s7 = sand.u32 1, %s641_s11  }
  0x24   : > { %p38_p11 = scmp.eq.s32.totalorder %s35_s6, 0  ;;  %s405_s8 = sshll.u32 %s139_s7, 4 }
  0x25   : > { %s419_s16 = sshll.u32 %s649_s13, 8  ;;  %s143_s26 = scalar_lea.vmem [#allocation2], %s405_s8 }
  0x26   : > { %s776_s15 = scalar_select %p38_p11, %s641_s11, %s40_s3  }
  0x27   : > { %s151_s24 = scalar_lea.hbm %s866_s0, %s419_s16  ;;  %s152_s29 = sshll.u32 %s143_s26, 4  ;;  %s153_s29 = int_to_ptr.vmem [resolvable:$true] %s152_s29 }
  0x28   : > { %p784_p2 = pnand %p459_p0, %p761_p12  ;;  %s140_s30 = scalar_lea.sflag [#allocation3], %s139_s7 }
  0x29   : > { %s554_s6 = scalar_lea.vmem %s153_s29, 256  ;;  %s658_s3 = smov [#allocation2]  }
  0x2a   : > { %p543_p3 = pneg %p784_p2  ;;  %p555_p5 = scmp.ne.s32.totalorder %s153_s29, %s554_s6 }
  0x2b   : > { %s559_s27 = sshll.u32 %s658_s3, 4  ;;  %s560_s27 = int_to_ptr.vmem [resolvable:$false] %s559_s27 }
  0x2c   : > { %p557_p7 = pnand %p555_p5, %p543_p3  ;;  %s561_s16 = scalar_lea.vmem %s560_s27, 512 }
  0x2d   : > { %p562_p6 = scmp.lt.s32.totalorder %s153_s29, %s560_s27  ;;  %p563_p9 = scmp.lt.s32.totalorder %s561_s16, %s554_s6 }
  0x2e   : > { %p558_p4 = pneg %p557_p7 }
  0x2f   : > { %p564_p11 = por %p563_p9, %p562_p6 }
  0x31   : > { %p565_p10 = pnand %p564_p11, %p558_p4 }
  0x33   : > { %568 = shalt.err (!%p565_p10)
}
  0x34   : > { %s880_s4 = smov 128   ;;  %164 = sbr.rel (%p731_p8) target bundleno = 278 (0x116), region = 28 }
  0x35   : > { %453 = dma.hbm_to_vmem [thread:$0]  (!%p784_p2), %s151_s24, 256, %s153_s29, %s140_s30, %s880_s4, %s880_s4, %s657_s28  }
  0x36   : > { %s798_s7 = sand.u32 (!%p731_p8), 1, %s637_s10   ;;  %p881_p12 = scmp.ne.s32.totalorder (!%p731_p8), %s873_s19, 0 }
  0x37   : > { %s409_s27 = sshll.u32 (!%p731_p8), %s798_s7, 4  ;;  %s167_s8 = scalar_lea.sflag (!%p731_p8), [#allocation3], %s798_s7 }
  0x38   : > { %s170_s22 = scalar_lea.vmem (!%p731_p8), [#allocation2], %s409_s27 }
  0x39   : > { %620 = dma.done.wait (%p881_p12), %s167_s8, 256  }
  0x3a   : > { %622 = vsyncadd (%p881_p12), %s167_s8, 4294967040 }
  0x3b   : > { %624 = dma.done.wait (%p711_p1), [#allocation6], 512  }
  0x3c   : > { %626 = vsyncadd (%p711_p1), [#allocation6], 4294966784  ;;  %vm203_vm0 = vcmask 261120   ;;  %v202_v0 = vld [vmem:[#allocation5 + $0x18] sm:$0xff]  ;;  %v201_v1 = vld [vmem:[#allocation5 + $0x10] sm:$0xff]  ;;  %s194_s17 = scalar_lea.vmem [#allocation7], %s409_s27 }
  0x3d   : > { %427 = vmatprep.subr.mxu0 %v202_v0  ;;  %v197_v2 = vld [vmem:[%s170_s22] sm:$0xff]  ;;  %v200_v3 = vld [vmem:[#allocation5 + $0x8] sm:$0xff]  ;;  %s303_s19 = sshll.u32 %s194_s17, 4  ;;  %s420_s21 = sshll.u32 %s645_s12, 8  ;;  %s813_s19 = int_to_ptr.vmem [resolvable:$true] %s303_s19 }
  0x3e   : > { %428 = vmatpush3.msra.mxu0 %v202_v0  ;;  %435 = vmatprep.mubr.msk.f32.mxu0 %vm203_vm0, %v197_v2  ;;  %v199_v4 = vld [vmem:[#allocation5] sm:$0xff]  ;;  %v198_v5 = vld [vmem:[%s170_s22 + $0x8] sm:$0xff]  ;;  %s818_s24 = scalar_lea.hbm %s868_s2, %s420_s21  ;;  %s288_s26 = scalar_lea.sflag [#allocation4], %s798_s7 }
  0x3f   : > { %429 = vmatprep.subr.mxu0 %v201_v1  ;;  %s569_s29 = scalar_lea.vmem %s813_s19, 256  ;;  %s659_s12 = smov [#allocation7]  }
  0x40   : > { %430 = vmatpush3.msra.mxu0 %v201_v1  ;;  %p570_p1 = scmp.ne.s32.totalorder %s813_s19, %s569_s29  ;;  %s573_s18 = sshll.u32 %s659_s12, 4  ;;  %s574_s18 = int_to_ptr.vmem [resolvable:$false] %s573_s18 }
  0x41   : > { %431 = vmatprep.subr.mxu0 %v200_v3  ;;  %s575_s30 = scalar_lea.vmem %s574_s18, 512  ;;  %p576_p0 = scmp.lt.s32.totalorder %s813_s19, %s574_s18 }
  0x42   : > { %432 = vmatpush3.msra.mxu0 %v200_v3  ;;  %p571_p8 = pnand %p570_p1, %p767_p13  ;;  %p577_p2 = scmp.lt.s32.totalorder %s575_s30, %s569_s29 }
  0x43   : > { %433 = vmatprep.subr.mxu0 %v199_v4 }
  0x44   : > { %434 = vmatpush3.msra.mxu0 %v199_v4  ;;  %p572_p10 = pneg %p571_p8  ;;  %p578_p3 = por %p577_p2, %p576_p0 }
  0x45   : > { %436 = vmatmul.mubr.msk.f32.vlgmr.msra.gmra.mxu0 %vm203_vm0, %v198_v5 }
  0x46   : > { %p579_p5 = pnand %p578_p3, %p572_p10 }
 0x105   : > { %v437_v6 = vpop.f32.mrf.mxu0 }
 0x106   : > { %286 = vst [vmem:[%s194_s17 + $0x8] sm:$0xff] %v437_v6 }
 0x107   : > { %v276_v7 = vpop.f32.mrf.mxu0 }
 0x108   : > { %285 = vst [vmem:[%s194_s17] sm:$0xff] %v276_v7 }
 0x109   : > { %582 = shalt.err (!%p579_p5)
}
 0x10a   : > { %s583_s6 = scalar_lea.hbm %s818_s24, 256  ;;  %s587_s4 = scalar_lea.hbm %s868_s2, 512 }
 0x10b   : > { %p584_p7 = scmp.ne.s32.totalorder %s818_s24, %s583_s6  ;;  %p588_p9 = scmp.lt.s32.totalorder %s818_s24, %s868_s2 }
 0x10c   : > { %p589_p11 = scmp.lt.s32.totalorder %s587_s4, %s583_s6 }
 0x10d   : > { %p585_p4 = pnand %p584_p7, %p767_p13 }
 0x10e   : > { %p590_p12 = por %p589_p11, %p588_p9 }
 0x10f   : > { %p586_p6 = pneg %p585_p4 }
 0x111   : > { %p591_p1 = pnand %p590_p12, %p586_p6 }
 0x113   : > { %594 = shalt.err (!%p591_p1)
}
 0x114   : > { %s660_s22 = smov 128   ;;  %s661_s17 = smov 8  }
 0x115   : > { %444 = dma.vmem_to_hbm [thread:$0]  (%p767_p13), %s813_s19, 256, %s818_s24, %s288_s26, %s660_s22, %s660_s22, %s661_s17  }
 0x116 PF: > { %s318_s21 = sand.u32 1, %s633_s9   ;;  %p882_p8 = scmp.ne.s32.totalorder %s874_s20, 0 }
 0x117   : > { %p883_p10 = scmp.ge.s32.totalorder %s653_s14, 2  ;;  %s319_s28 = scalar_lea.sflag [#allocation4], %s318_s21 }
 0x119   : > { %p455_p0 = pnand %p883_p10, %p882_p8 }
 0x11b   : > { %p456_p2 = pneg %p455_p0 }
 0x11d   : > { %628 = dma.done.wait (%p456_p2), %s319_s28, 256  }
 0x11e   : > { %630 = vsyncadd (%p456_p2), %s319_s28, 4294967040  ;;  %s19_s14 = sadd.s32 1, %s653_s14   ;;  %s884_s9 = smov %s637_s10 }
 0x11f   : > { %p16_p3 = scmp.ge.s32.totalorder %s19_s14, 4   ;;  %s885_s10 = smov %s641_s11 }
 0x120   : > { %s886_s11 = smov %s776_s15  ;;  %s887_s12 = smov %s649_s13 }
 0x121   : > { %s888_s13 = smov %s890_s25  ;;  %18 = sbr.rel (!%p16_p3) target bundleno = 7 (0x7), region = 77 }
 0x126   :  { %324 = vsyncpa [#allocation3], 1 }
 0x127   :  { %326 = vsyncpa [#allocation3 + $0x1], 1 }
 0x128   :  { %327 = vsyncpa [#allocation6], 1 }
 0x129   :  { %328 = vsyncpa [#allocation4], 1 }
 0x12a   :  { %330 = vsyncpa [#allocation4 + $0x1], 1 }

</bundles_post_ra>
